<compile_context>
chip_gen: v5e
topology: v5e:2x2
jax: 0.10.0
libtpu: 0.0.40
codegen_flags: <defaults>
</compile_context>

<pallas_src>
import functools

import jax
import jax.numpy as jnp
from jax import lax
from jax.experimental import pallas as pl
from jax.experimental.pallas import tpu as pltpu


def _elementwise_dtype():
    """bf16 elementwise on chips with a bf16 VPU (v6e / v7x); f32 otherwise."""
    try:
        kind = jax.devices()[0].device_kind.lower()
    except Exception:
        return jnp.float32
    if "v6" in kind or "v7" in kind:
        return jnp.bfloat16
    return jnp.float32


def _pdc_block_kernel(x_ref, wt_ref, pw_ref, o_ref, *, H, C, ew_dtype):
    """One grid step = `images_per_block` whole images, lane-dense layout.

    x_ref : (BR, W*C)   f32  activations, BR = images_per_block * H
    wt_ref: (9, W*C)    f32  3x3 depthwise taps tiled across W (W-border zeroed)
    pw_ref: (128, 128)  bf16 block-diag 1x1 pointwise weight (128//C pixel copies)
    o_ref : (BR, W*C)        output
    """
    BR, WC = o_ref.shape

    x_res = x_ref[...]                     # f32, kept for the residual add
    x = x_res.astype(ew_dtype)             # elementwise working dtype

    def tap(k):
        # (1, W*C) tiled depthwise weight row; tiny cast, broadcast over rows.
        return wt_ref[k:k + 1, :].astype(ew_dtype)

    # Row index inside its image (blocks hold whole images only) -> (BR, 1).
    h = lax.broadcasted_iota(jnp.int32, (BR, 1), 0) % H

    # --- depthwise 3x3, padding=1: 9 lane-dense FMAs -----------------------
    # W shifts are +-C lane rolls (XLU slot); columns whose roll wrapped
    # around the W border were zeroed in the tiled weights by the wrapper.
    # kh = 1 (centre row) initialises the accumulator.
    acc = x * tap(4)
    acc = acc + pltpu.roll(x, C, 1) * tap(3)        # x[., w-1, :]
    acc = acc + pltpu.roll(x, WC - C, 1) * tap(5)   # x[., w+1, :]

    # kh = 0: taps reading row h-1 (zero at the top row of each image).
    x_dn = jnp.where(h == 0, 0.0, pltpu.roll(x_res, 1, 0)).astype(ew_dtype)
    acc = acc + x_dn * tap(1)
    acc = acc + pltpu.roll(x_dn, C, 1) * tap(0)
    acc = acc + pltpu.roll(x_dn, WC - C, 1) * tap(2)

    # kh = 2: taps reading row h+1 (zero at the bottom row of each image).
    x_up = jnp.where(h == H - 1, 0.0,
                     pltpu.roll(x_res, BR - 1, 0)).astype(ew_dtype)
    acc = acc + x_up * tap(7)
    acc = acc + pltpu.roll(x_up, C, 1) * tap(6)
    acc = acc + pltpu.roll(x_up, WC - C, 1) * tap(8)

    y = jnp.maximum(acc, 0.0).astype(jnp.bfloat16)  # ReLU; bf16 MXU operands

    # --- 1x1 pointwise conv + residual, 128-lane-grouped --------------------
    # One shared (128,128) block-diagonal weight covers 128//C pixels; loop
    # over the W*C/128 lane groups, each a single lane-aligned MXU pass and a
    # lane-dense (128-wide) unmasked store.
    pw = pw_ref[...]
    for j in range(WC // 128):
        lo = j * 128
        y2 = jnp.dot(y[:, lo:lo + 128], pw, preferred_element_type=jnp.float32)
        o_ref[:, lo:lo + 128] = (y2 + x_res[:, lo:lo + 128]).astype(o_ref.dtype)


def pdc_block_forward(x_nhwc, dw_weight, pw_weight, *, images_per_block=1):
    """x_nhwc: (N, H, W, C); dw_weight: (3, 3, C); pw_weight: (C, Cout)."""
    N, H, W, C = x_nhwc.shape
    Cout = pw_weight.shape[1]
    assert Cout == C, "stride=1 PDCBlock requires ouplane == inplane"
    R, WC = N * H, W * C
    # TODO(synk): pad W*C (and zero the padded taps/weights) to support
    # shapes where W*C is not a multiple of 128 (e.g. pidinet C=60).
    assert WC % 128 == 0, "W*C must be a multiple of 128 for lane-dense tiles"
    # TODO(synk): for C >= 128 use the direct (rows*W, C) x (C, Cout) matmul
    # instead of the 128-lane-grouped block-diagonal weight.
    assert C <= 128 and 128 % C == 0, "128-grouped pointwise needs 128 % C == 0"
    assert N % images_per_block == 0
    BR = images_per_block * H
    assert BR % 8 == 0, "block rows must be a multiple of 8 (sublane tiling)"

    ew_dtype = _elementwise_dtype()

    # Lane-dense view of the activations: (N*H, W*C).  Contiguous reshape.
    x2d = x_nhwc.reshape(R, WC)

    # 3x3 depthwise taps tiled across W.  Zero the columns whose lane-rolled
    # input would have wrapped around the W border (folds the conv's
    # padding=1 handling along W into the weights).
    wt = jnp.broadcast_to(dw_weight[:, :, None, :].astype(jnp.float32),
                          (3, 3, W, C))
    wt = wt.at[:, 0, 0, :].set(0.0)        # kw=0 reads w-1 -> invalid at w=0
    wt = wt.at[:, 2, W - 1, :].set(0.0)    # kw=2 reads w+1 -> invalid at w=W-1
    wt9 = wt.reshape(9, WC)

    # Shared (128, 128) block-diagonal pointwise weight: one copy of pw per
    # pixel in a 128-lane group (g = 128 // C pixels per group).
    g = 128 // C
    pw128 = jnp.einsum("gh,cd->gchd",
                       jnp.eye(g, dtype=jnp.float32),
                       pw_weight.astype(jnp.float32)).reshape(128, 128)
    pw128 = pw128.astype(jnp.bfloat16)

    grid = (N // images_per_block,)

    # VMEM budget: double-buffered in/out blocks + working temporaries +
    # resident weights, with headroom; clamped below every chip's physical VMEM.
    blk_bytes = BR * WC * 4
    est_vmem = 16 * blk_bytes + wt9.size * 4 + pw128.size * 2 + (1 << 20)
    vmem_limit = int(min(64 << 20, max(est_vmem, 4 << 20)))

    flops = int(18 * R * WC + 2 * R * WC * 128)
    bytes_accessed = int(2 * R * WC * 4 + wt9.size * 4 + pw128.size * 2)

    out2d = pl.pallas_call(
        functools.partial(_pdc_block_kernel, H=H, C=C, ew_dtype=ew_dtype),
        out_shape=jax.ShapeDtypeStruct((R, WC), x_nhwc.dtype),
        grid=grid,
        in_specs=[
            pl.BlockSpec((BR, WC), lambda n: (n, 0)),
            pl.BlockSpec((9, WC), lambda n: (0, 0)),      # VMEM-resident
            pl.BlockSpec((128, 128), lambda n: (0, 0)),   # VMEM-resident
        ],
        out_specs=pl.BlockSpec((BR, WC), lambda n: (n, 0)),
        compiler_params=pltpu.CompilerParams(
            dimension_semantics=("parallel",),
            vmem_limit_bytes=vmem_limit),
        cost_estimate=pl.CostEstimate(flops=flops, transcendentals=0,
                                      bytes_accessed=bytes_accessed),
    )(x2d, wt9, pw128)

    return out2d.reshape(N, H, W, C)
    # TODO(synk): at resolutions where one image exceeds the per-block VMEM
    # budget, switch to row-tiling within an image with explicit halo rows.


def _reference_nhwc(x_nhwc, dw_weight, pw_weight):
    """Pure-JAX reference (mirrors the PyTorch forward) for validation."""
    C = x_nhwc.shape[-1]
    # depthwise 3x3, pad=1, groups=C
    dw_hwio = dw_weight.reshape(3, 3, 1, C)
    y = lax.conv_general_dilated(
        x_nhwc, dw_hwio, window_strides=(1, 1), padding=((1, 1), (1, 1)),
        dimension_numbers=("NHWC", "HWIO", "NHWC"), feature_group_count=C)
    y = jnp.maximum(y, 0.0)
    # pointwise 1x1
    pw_hwio = pw_weight.reshape(1, 1, C, -1)
    y = lax.conv_general_dilated(
        y, pw_hwio, window_strides=(1, 1), padding="VALID",
        dimension_numbers=("NHWC", "HWIO", "NHWC"))
    return y + x_nhwc


if __name__ == "__main__":
    # small shapes consistent with the module: N=2, C(in)=C(out)=16, H=W=16
    N, C, H, W = 2, 16, 16, 16
    key = jax.random.PRNGKey(0)
    k_x, k_dw, k_pw = jax.random.split(key, 3)

    # NCHW input (PyTorch convention) -> transpose to NHWC for the kernel
    x_nchw = jax.random.normal(k_x, (N, C, H, W), dtype=jnp.float32)
    x_nhwc = jnp.transpose(x_nchw, (0, 2, 3, 1))

    # conv1: PyTorch weight (C, 1, 3, 3) depthwise -> (3, 3, C)
    dw_w_torch = jax.random.normal(k_dw, (C, 1, 3, 3), dtype=jnp.float32) * 0.1
    dw_weight = jnp.transpose(dw_w_torch[:, 0, :, :], (1, 2, 0))     # (3,3,C)

    # conv2: PyTorch weight (Cout, C, 1, 1) -> (C, Cout)
    pw_w_torch = jax.random.normal(k_pw, (C, C, 1, 1), dtype=jnp.float32) * 0.1
    pw_weight = jnp.transpose(pw_w_torch[:, :, 0, 0], (1, 0))        # (C, Cout)

    out = pdc_block_forward(x_nhwc, dw_weight, pw_weight, images_per_block=1)
    out = jax.block_until_ready(out)

    ref = _reference_nhwc(x_nhwc, dw_weight, pw_weight)
    assert out.shape == (N, H, W, C)
    # bf16 MXU operands (+ bf16 elementwise on v6e/v7x) vs fp32 reference
    assert jnp.allclose(out, ref, atol=3e-2, rtol=3e-2), "mismatch vs reference"

    # TODO(synk): stride>1 path (MaxPool2d + biased 1x1 shortcut conv) and the
    # pdc=='rd' 5x5 dilated variant are not implemented (default config only).
    print("KERNEL_OK")
</pallas_src>

<mosaic_0001>
module attributes {stable_mosaic.version = 11 : i64} {
  func.func @_pdc_block_kernel(%arg0: i32, %arg1: memref<16x256xf32, #tpu.memory_space<vmem>>, %arg2: memref<9x256xf32, #tpu.memory_space<vmem>>, %arg3: memref<128x128xbf16, #tpu.memory_space<vmem>>, %arg4: memref<16x256xf32, #tpu.memory_space<vmem>>) attributes {dimension_semantics = [#tpu.dimension_semantics<parallel>], iteration_bounds = array<i64: 2>, scalar_prefetch = 0 : i64, scratch_operands = 0 : i64, tpu.core_type = #tpu.core_type<tc>, window_params = [{transform_indices = @transform_0, window_bounds = array<i64: 16, 256>}, {pipeline_mode = #tpu.pipeline_mode<synchronous>, transform_indices = @transform_1, window_bounds = array<i64: 9, 256>}, {pipeline_mode = #tpu.pipeline_mode<synchronous>, transform_indices = @transform_2, window_bounds = array<i64: 128, 128>}, {transform_indices = @transform_3, window_bounds = array<i64: 16, 256>}]} {
    %c0 = arith.constant 0 : index
    %c0_0 = arith.constant 0 : index
    %0 = vector.load %arg1[%c0, %c0_0] : memref<16x256xf32, #tpu.memory_space<vmem>>, vector<16x256xf32>
    %1 = tpu.iota {dimensions = array<i32: 0>} : vector<16x1xi32>
    %c16_i32 = arith.constant 16 : i32
    %c0_i32 = arith.constant 0 : i32
    %2 = arith.cmpi eq, %c16_i32, %c0_i32 : i32
    %c1_i32 = arith.constant 1 : i32
    %3 = arith.select %2, %c1_i32, %c16_i32 : i32
    %4 = vector.broadcast %3 : i32 to vector<16x1xi32>
    %5 = arith.remsi %1, %4 : vector<16x1xi32>
    %c0_i32_1 = arith.constant 0 : i32
    %6 = vector.broadcast %c0_i32_1 : i32 to vector<16x1xi32>
    %7 = arith.cmpi ne, %5, %6 : vector<16x1xi32>
    %c0_i32_2 = arith.constant 0 : i32
    %8 = vector.broadcast %c0_i32_2 : i32 to vector<16x1xi32>
    %9 = arith.cmpi slt, %5, %8 : vector<16x1xi32>
    %c0_i32_3 = arith.constant 0 : i32
    %10 = arith.cmpi slt, %3, %c0_i32_3 : i32
    %11 = vector.broadcast %10 : i1 to vector<16x1xi1>
    %12 = vector.broadcast %11 : vector<16x1xi1> to vector<16x1xi1>
    %13 = arith.xori %9, %12 : vector<16x1xi1>
    %14 = arith.andi %13, %7 : vector<16x1xi1>
    %15 = vector.broadcast %3 : i32 to vector<16x1xi32>
    %16 = arith.addi %5, %15 : vector<16x1xi32>
    %17 = arith.select %14, %16, %5 : vector<16x1xi1>, vector<16x1xi32>
    %c4 = arith.constant 4 : index
    %c0_4 = arith.constant 0 : index
    %18 = vector.load %arg2[%c4, %c0_4] : memref<9x256xf32, #tpu.memory_space<vmem>>, vector<1x256xf32>
    %19 = vector.broadcast %18 : vector<1x256xf32> to vector<16x256xf32>
    %20 = arith.mulf %0, %19 : vector<16x256xf32>
    %c16_i32_5 = arith.constant 16 : i32
    %21 = tpu.dynamic_rotate %0 by %c16_i32_5 dim 1 : vector<16x256xf32>, i32 -> vector<16x256xf32>
    %c3 = arith.constant 3 : index
    %c0_6 = arith.constant 0 : index
    %22 = vector.load %arg2[%c3, %c0_6] : memref<9x256xf32, #tpu.memory_space<vmem>>, vector<1x256xf32>
    %23 = vector.broadcast %22 : vector<1x256xf32> to vector<16x256xf32>
    %24 = arith.mulf %21, %23 : vector<16x256xf32>
    %25 = arith.addf %20, %24 : vector<16x256xf32>
    %c240_i32 = arith.constant 240 : i32
    %26 = tpu.dynamic_rotate %0 by %c240_i32 dim 1 : vector<16x256xf32>, i32 -> vector<16x256xf32>
    %c5 = arith.constant 5 : index
    %c0_7 = arith.constant 0 : index
    %27 = vector.load %arg2[%c5, %c0_7] : memref<9x256xf32, #tpu.memory_space<vmem>>, vector<1x256xf32>
    %28 = vector.broadcast %27 : vector<1x256xf32> to vector<16x256xf32>
    %29 = arith.mulf %26, %28 : vector<16x256xf32>
    %30 = arith.addf %25, %29 : vector<16x256xf32>
    %c0_i32_8 = arith.constant 0 : i32
    %31 = vector.broadcast %c0_i32_8 : i32 to vector<16x1xi32>
    %32 = arith.cmpi eq, %17, %31 : vector<16x1xi32>
    %c1_i32_9 = arith.constant 1 : i32
    %33 = tpu.dynamic_rotate %0 by %c1_i32_9 dim 0 : vector<16x256xf32>, i32 -> vector<16x256xf32>
    %cst = arith.constant 0.000000e+00 : f32
    %34 = vector.shape_cast %32 : vector<16x1xi1> to vector<16x1xi1>
    %35 = vector.broadcast %34 : vector<16x1xi1> to vector<16x256xi1>
    %36 = vector.broadcast %cst : f32 to vector<16x256xf32>
    %37 = arith.select %35, %36, %33 : vector<16x256xi1>, vector<16x256xf32>
    %c1 = arith.constant 1 : index
    %c0_10 = arith.constant 0 : index
    %38 = vector.load %arg2[%c1, %c0_10] : memref<9x256xf32, #tpu.memory_space<vmem>>, vector<1x256xf32>
    %39 = vector.broadcast %38 : vector<1x256xf32> to vector<16x256xf32>
    %40 = arith.mulf %37, %39 : vector<16x256xf32>
    %41 = arith.addf %30, %40 : vector<16x256xf32>
    %c16_i32_11 = arith.constant 16 : i32
    %42 = tpu.dynamic_rotate %37 by %c16_i32_11 dim 1 : vector<16x256xf32>, i32 -> vector<16x256xf32>
    %c0_12 = arith.constant 0 : index
    %c0_13 = arith.constant 0 : index
    %43 = vector.load %arg2[%c0_12, %c0_13] : memref<9x256xf32, #tpu.memory_space<vmem>>, vector<1x256xf32>
    %44 = vector.broadcast %43 : vector<1x256xf32> to vector<16x256xf32>
    %45 = arith.mulf %42, %44 : vector<16x256xf32>
    %46 = arith.addf %41, %45 : vector<16x256xf32>
    %c240_i32_14 = arith.constant 240 : i32
    %47 = tpu.dynamic_rotate %37 by %c240_i32_14 dim 1 : vector<16x256xf32>, i32 -> vector<16x256xf32>
    %c2 = arith.constant 2 : index
    %c0_15 = arith.constant 0 : index
    %48 = vector.load %arg2[%c2, %c0_15] : memref<9x256xf32, #tpu.memory_space<vmem>>, vector<1x256xf32>
    %49 = vector.broadcast %48 : vector<1x256xf32> to vector<16x256xf32>
    %50 = arith.mulf %47, %49 : vector<16x256xf32>
    %51 = arith.addf %46, %50 : vector<16x256xf32>
    %c15_i32 = arith.constant 15 : i32
    %52 = vector.broadcast %c15_i32 : i32 to vector<16x1xi32>
    %53 = arith.cmpi eq, %17, %52 : vector<16x1xi32>
    %c15_i32_16 = arith.constant 15 : i32
    %54 = tpu.dynamic_rotate %0 by %c15_i32_16 dim 0 : vector<16x256xf32>, i32 -> vector<16x256xf32>
    %cst_17 = arith.constant 0.000000e+00 : f32
    %55 = vector.shape_cast %53 : vector<16x1xi1> to vector<16x1xi1>
    %56 = vector.broadcast %55 : vector<16x1xi1> to vector<16x256xi1>
    %57 = vector.broadcast %cst_17 : f32 to vector<16x256xf32>
    %58 = arith.select %56, %57, %54 : vector<16x256xi1>, vector<16x256xf32>
    %c7 = arith.constant 7 : index
    %c0_18 = arith.constant 0 : index
    %59 = vector.load %arg2[%c7, %c0_18] : memref<9x256xf32, #tpu.memory_space<vmem>>, vector<1x256xf32>
    %60 = vector.broadcast %59 : vector<1x256xf32> to vector<16x256xf32>
    %61 = arith.mulf %58, %60 : vector<16x256xf32>
    %62 = arith.addf %51, %61 : vector<16x256xf32>
    %c16_i32_19 = arith.constant 16 : i32
    %63 = tpu.dynamic_rotate %58 by %c16_i32_19 dim 1 : vector<16x256xf32>, i32 -> vector<16x256xf32>
    %c6 = arith.constant 6 : index
    %c0_20 = arith.constant 0 : index
    %64 = vector.load %arg2[%c6, %c0_20] : memref<9x256xf32, #tpu.memory_space<vmem>>, vector<1x256xf32>
    %65 = vector.broadcast %64 : vector<1x256xf32> to vector<16x256xf32>
    %66 = arith.mulf %63, %65 : vector<16x256xf32>
    %67 = arith.addf %62, %66 : vector<16x256xf32>
    %c240_i32_21 = arith.constant 240 : i32
    %68 = tpu.dynamic_rotate %58 by %c240_i32_21 dim 1 : vector<16x256xf32>, i32 -> vector<16x256xf32>
    %c8 = arith.constant 8 : index
    %c0_22 = arith.constant 0 : index
    %69 = vector.load %arg2[%c8, %c0_22] : memref<9x256xf32, #tpu.memory_space<vmem>>, vector<1x256xf32>
    %70 = vector.broadcast %69 : vector<1x256xf32> to vector<16x256xf32>
    %71 = arith.mulf %68, %70 : vector<16x256xf32>
    %72 = arith.addf %67, %71 : vector<16x256xf32>
    %cst_23 = arith.constant 0.000000e+00 : f32
    %73 = vector.broadcast %cst_23 : f32 to vector<16x256xf32>
    %74 = arith.maximumf %72, %73 : vector<16x256xf32>
    %75 = arith.truncf %74 : vector<16x256xf32> to vector<16x256xbf16>
    %c0_24 = arith.constant 0 : index
    %c0_25 = arith.constant 0 : index
    %76 = vector.load %arg3[%c0_24, %c0_25] : memref<128x128xbf16, #tpu.memory_space<vmem>>, vector<128x128xbf16>
    %77 = vector.extract_strided_slice %75 {offsets = [0, 0], sizes = [16, 128], strides = [1, 1]} : vector<16x256xbf16> to vector<16x128xbf16>
    %cst_26 = arith.constant dense<0.000000e+00> : vector<16x128xf32>
    %78 = tpu.matmul %77, %76, %cst_26 {dimension_numbers = #tpu.dot_dimension_numbers<[1], [0], [0], [1], [0, 0, 1, 1], [], []>} : vector<16x128xbf16>, vector<128x128xbf16>, vector<16x128xf32> -> vector<16x128xf32>
    %79 = vector.extract_strided_slice %0 {offsets = [0, 0], sizes = [16, 128], strides = [1, 1]} : vector<16x256xf32> to vector<16x128xf32>
    %80 = arith.addf %78, %79 : vector<16x128xf32>
    %c0_27 = arith.constant 0 : index
    %c0_28 = arith.constant 0 : index
    %81 = vector.load %arg4[%c0_27, %c0_28] : memref<16x256xf32, #tpu.memory_space<vmem>>, vector<16x128xf32>
    tpu.vector_store %arg4[%c0_27, %c0_28], %80 {strides = array<i32>} : memref<16x256xf32, #tpu.memory_space<vmem>>, vector<16x128xf32>,
    %82 = vector.extract_strided_slice %75 {offsets = [0, 128], sizes = [16, 128], strides = [1, 1]} : vector<16x256xbf16> to vector<16x128xbf16>
    %cst_29 = arith.constant dense<0.000000e+00> : vector<16x128xf32>
    %83 = tpu.matmul %82, %76, %cst_29 {dimension_numbers = #tpu.dot_dimension_numbers<[1], [0], [0], [1], [0, 0, 1, 1], [], []>} : vector<16x128xbf16>, vector<128x128xbf16>, vector<16x128xf32> -> vector<16x128xf32>
    %84 = vector.extract_strided_slice %0 {offsets = [0, 128], sizes = [16, 128], strides = [1, 1]} : vector<16x256xf32> to vector<16x128xf32>
    %85 = arith.addf %83, %84 : vector<16x128xf32>
    %c0_30 = arith.constant 0 : index
    %c128 = arith.constant 128 : index
    %86 = vector.load %arg4[%c0_30, %c128] : memref<16x256xf32, #tpu.memory_space<vmem>>, vector<16x128xf32>
    tpu.vector_store %arg4[%c0_30, %c128], %85 {strides = array<i32>} : memref<16x256xf32, #tpu.memory_space<vmem>>, vector<16x128xf32>,
    return
  }
  func.func @transform_0(%arg0: i32) -> (i32, i32) {
    %c0_i32 = arith.constant 0 : i32
    %c0_i32_0 = arith.constant 0 : i32
    return %arg0, %c0_i32 : i32, i32
  }
  func.func @transform_1(%arg0: i32) -> (i32, i32) {
    %c0_i32 = arith.constant 0 : i32
    %c0_i32_0 = arith.constant 0 : i32
    %c0_i32_1 = arith.constant 0 : i32
    return %c0_i32, %c0_i32_0 : i32, i32
  }
  func.func @transform_2(%arg0: i32) -> (i32, i32) {
    %c0_i32 = arith.constant 0 : i32
    %c0_i32_0 = arith.constant 0 : i32
    %c0_i32_1 = arith.constant 0 : i32
    return %c0_i32, %c0_i32_0 : i32, i32
  }
  func.func @transform_3(%arg0: i32) -> (i32, i32) {
    %c0_i32 = arith.constant 0 : i32
    %c0_i32_0 = arith.constant 0 : i32
    return %arg0, %c0_i32 : i32, i32
  }
}

</mosaic_0001>

<bundles_post_ra>
// kernel: tpu_custom_call.1
= control target key start
LH: loop header
LB: loop body
LE: loop exit
PB: predicated region body
PF: predicated region fallthrough
CT: control target
= control target key end

     0   :  { %8 = vsyncpa [#allocation3], 0  ;;  %s1356_s0 = inlined_call_operand.hbm [shape: f32[32,256], index: 0, kind: input, shape index: {}]   ;;  %s1357_s1 = inlined_call_operand.hbm [shape: f32[9,256], index: 1, kind: input, shape index: {}]   ;;  %s1358_s2 = inlined_call_operand.hbm [shape: bf16[128,128], index: 2, kind: input, shape index: {}]   ;;  %s1359_s3 = inlined_call_operand.hbm [shape: f32[32,256], index: 3, kind: output, shape index: {}]  }
   0x1   :  { %10 = vsyncpa [#allocation3 + $0x1], 0 }
   0x2   :  { %11 = vsyncpa [#allocation6], 0 }
   0x3   :  { %12 = vsyncpa [#allocation4], 0 }
   0x4   :  { %14 = vsyncpa [#allocation4 + $0x1], 0  ;;  %s1052_s12 = smov 0   ;;  %s1054_s13 = smov 0  }
   0x5   :  { %s1056_s14 = smov 0   ;;  %s1058_s15 = smov 0  }
   0x6 LB: > { %s1073_s16 = sadd.s32 4294967295, %s1021_s15   ;;  %s723_s17 = sadd.s32 4294967294, %s1021_s15   ;;  %s1021_s15 = sphi %s1058_s15, %s1369_s15   ;;  %s1017_s14 = sphi %s1056_s14, %s1368_s14   ;;  %s1013_s13 = sphi %s1054_s13, %s1367_s13   ;;  %s1009_s12 = sphi %s1052_s12, %s1366_s12  }
   0x7   : > { %p40_p0 = scmp.ne.s32.totalorder %s1013_s13, %s1009_s12  ;;  %p41_p1 = scmp.eq.s32.totalorder %s1073_s16, 0 }
   0x8   : > { %p106_p2 = scmp.eq.s32.totalorder %s1073_s16, 1  ;;  %p112_p3 = scmp.eq.s32.totalorder %s723_s17, 1 }
   0x9   : > { %p1082_p4 = por %p41_p1, %p40_p0  ;;  %p724_p5 = scmp.ge.s32.totalorder %s1021_s15, 1 }
   0xa   : > { %p1087_p6 = por %p112_p3, %p40_p0  ;;  %p119_p7 = scmp.lt.s32.totalorder %s1021_s15, 3 }
   0xb   : > { %s130_s22 = sshll.u32 %s1357_s1, 4  ;;  %s1023_s24 = smov [#allocation5]   ;;  %s131_s22 = int_to_ptr.hbm [resolvable:$true] %s130_s22 }
   0xc   : > { %p1095_p8 = pnand %p724_p5, %p119_p7  ;;  %s132_s25 = sshll.u32 %s1023_s24, 4  ;;  %s133_s25 = int_to_ptr.vmem [resolvable:$true] %s132_s25 }
   0xd   : > { %s144_s28 = sshll.u32 %s1358_s2, 4  ;;  %s1024_s29 = smov 256   ;;  %s145_s28 = int_to_ptr.hbm [resolvable:$true] %s144_s28 }
   0xe   : > { %p799_p9 = pneg %p1095_p8  ;;  %s1025_s30 = smov 16  }
   0xf   : > { %s1026_s4 = smov [#allocation7]   ;;  %s1027_s6 = smov 64  }
  0x10   : > { %p800_p10 = pnand %p799_p9, %p41_p1  ;;  %s146_s5 = sshll.u32 %s1026_s4, 4  ;;  %s147_s5 = int_to_ptr.vmem [resolvable:$true] %s146_s5 }
  0x11   : > { %s1028_s7 = smov 4   ;;  %s1111_s8 = sadd.s32 1, %s1021_s15  }
  0x12   : > { %802 = dma.hbm_to_vmem [thread:$0]  (!%p800_p10), %s131_s22, 512, %s133_s25, [#allocation6], %s1024_s29, %s1024_s29, %s1025_s30  }
  0x13   : > { %805 = dma.hbm_to_vmem [thread:$0]  (!%p800_p10), %s145_s28, 1024, %s147_s5, [#allocation6], %s1027_s6, %s1027_s6, %s1028_s7  }
  0x14   : > { %s24_s9 = ssub.s32 %s1021_s15, %s1111_s8  ;;  %s27_s10 = sadd.s32 1, %s1017_s14 }
  0x15   : > { %p25_p12 = scmp.eq.s32.totalorder %s24_s9, 0  ;;  %p34_p13 = scmp.ne.s32.totalorder %s1017_s14, %s1013_s13 }
  0x16   : > { %p35_p0 = scmp.eq.s32.totalorder %s1021_s15, 0  ;;  %p816_p7 = scmp.lt.s32.totalorder %s1021_s15, 2 }
  0x17   : > { %s1120_s11 = scalar_select %p25_p12, %s1017_s14, %s27_s10  }
  0x18   : > { %p36_p3 = por %p35_p0, %p34_p13  ;;  %p1124_p5 = por %p106_p2, %p34_p13 }
  0x19   : > { %s160_s20 = sand.u32 1, %s1017_s14   ;;  %s776_s22 = sshll.u32 %s1021_s15, 5 }
  0x1a   : > { %s728_s21 = sshll.u32 %s160_s20, 5  ;;  %s170_s26 = scalar_lea.hbm %s1356_s0, %s776_s22 }
  0x1b   : > { %s164_s27 = scalar_lea.vmem [#allocation2], %s728_s21  ;;  %s171_s4 = sshll.u32 %s170_s26, 4  ;;  %s172_s4 = int_to_ptr.hbm [resolvable:$true] %s171_s4 }
  0x1c   : > { %s173_s28 = sshll.u32 %s164_s27, 4  ;;  %p1134_p9 = pnand %p816_p7, %p36_p3  ;;  %s174_s28 = int_to_ptr.vmem [resolvable:$true] %s173_s28 }
  0x1d   : > { %s161_s6 = scalar_lea.sflag [#allocation3], %s160_s20  ;;  %s921_s7 = sshra.s32 %s172_s4, 4  ;;  %s922_s7 = int_to_ptr.hbm [resolvable:$true] %s921_s7 }
  0x1e   : > { %s923_s9 = scalar_lea.hbm %s922_s7, 32  ;;  %p925_p10 = pneg %p1134_p9 }
  0x1f   : > { %p924_p2 = scmp.ne.s32.totalorder %s922_s7, %s923_s9  ;;  %s928_s22 = scalar_lea.hbm %s1356_s0, 64 }
  0x20   : > { %p929_p0 = scmp.lt.s32.totalorder %s922_s7, %s1356_s0  ;;  %p930_p3 = scmp.lt.s32.totalorder %s928_s22, %s923_s9 }
  0x21   : > { %p926_p12 = pnand %p925_p10, %p924_p2 }
  0x22   : > { %p931_p7 = por %p930_p3, %p929_p0 }
  0x23   : > { %p927_p13 = pneg %p926_p12 }
  0x25   : > { %p932_p11 = pnand %p931_p7, %p927_p13 }
  0x27   : > { %935 = shalt.err (!%p932_p11)
}
  0x28   : > { %809 = dma.hbm_to_vmem [thread:$0]  (!%p1134_p9), %s172_s4, 512, %s174_s28, %s161_s6, %s1024_s29, %s1024_s29, %s1025_s30  }
  0x29   : > { %185 = sbr.rel (%p1095_p8) target bundleno = 375 (0x177), region = 32  ;;  %s1154_s20 = sand.u32 (!%p1095_p8), 1, %s1013_s13  }
  0x2a   : > { %s733_s26 = sshll.u32 (!%p1095_p8), %s1154_s20, 5  ;;  %s188_s27 = scalar_lea.sflag (!%p1095_p8), [#allocation3], %s1154_s20 }
  0x2b   : > { %s191_s7 = scalar_lea.vmem (!%p1095_p8), [#allocation2], %s733_s26 }
  0x2e   : > { %996 = dma.done.wait (%p1082_p4), %s188_s27, 512  }
  0x2f   : > { %998 = vsyncadd (%p1082_p4), %s188_s27, 4294966784 }
  0x30   : > { %1000 = dma.done.wait (%p41_p1), [#allocation6], 1536  }
  0x31   : > { %1002 = vsyncadd (%p41_p1), [#allocation6], 4294965760  ;;  %v1168_v0 = vld [vmem:[%s191_s7 + $0x8] sm:$0xff]  ;;  %v1170_v1 = vld [vmem:[%s191_s7] sm:$0xff]  ;;  %s1029_s23 = smov 16   ;;  %s1030_s29 = smov 112   ;;  %v231_v2 = vlaneseq }
  0x32   : > { %273 = vrot.lane.b32.xlu1 %v1168_v0, %s1029_s23  ;;  %269 = vrot.lane.b32.xlu0 %v1170_v1, %s1029_s23  ;;  %v1178_v3 = vld [vmem:[%s191_s7 + $0x18] sm:$0xff]  ;;  %v1180_v4 = vld [vmem:[%s191_s7 + $0x10] sm:$0xff]  ;;  %v329_v7 = vrot.slane %v1170_v1, 7  ;;  %v330_v10 = vrot.slane %v1168_v0, 7  ;;  %v416_v18 = vrot.slane %v1170_v1, 1  ;;  %v417_v23 = vrot.slane %v1168_v0, 1 }
  0x33   : > { %299 = vrot.lane.b32.xlu2 %v1170_v1, %s1030_s29  ;;  %v232_v5 = vshrl.u32 %v231_v2, 7  ;;  %v331_v8 = vrot.slane %v1180_v4, 7  ;;  %v332_v11 = vrot.slane %v1178_v3, 7  ;;  %v418_v19 = vrot.slane %v1180_v4, 1  ;;  %v784_v36 = vld [vmem:[#allocation7 + $0x38] sm:$0xff]  ;;  %v783_v49 = vld [vmem:[#allocation7 + $0x30] sm:$0xff] }
  0x34   : > { %v419_v24 = vrot.slane %v1178_v3, 1  ;;  %v1248_v33 = vand.u32 127, %v231_v2  ;;  %v259_v34 = vld [vmem:[#allocation5 + $0x4] ss:$8 sm:$0x3]  ;;  %578 = vmatpush.bf16.msra.mxu0 %v784_v36  ;;  %598 = vmatpush.bf16.msra.mxu1 %v784_v36  ;;  %s786_s18 = sshll.u32 %s1073_s16, 5 }
  0x35   : > { %v238_v6 = vand.u32 15, %v232_v5  ;;  %vm333_vm0 = vcmp.lt.s32.totalorder %v232_v5, 1  ;;  %v233_v17 = vadd.s32 8, %v232_v5  ;;  %vm420_vm2 = vcmp.lt.s32.totalorder %v232_v5, 7  ;;  %v782_v61 = vld [vmem:[#allocation7 + $0x28] sm:$0xff]  ;;  %s224_s30 = scalar_lea.vmem [#allocation8], %s733_s26  ;;  %s627_s5 = scalar_lea.hbm %s1359_s3, %s786_s18 }
  0x36   : > { %v336_v9 = vsel %vm333_vm0, %v331_v8, %v329_v7  ;;  %v337_v13 = vsel %vm333_vm0, %v332_v11, %v330_v10  ;;  %v1202_v15 = vsel %vm333_vm0, %v329_v7, %v331_v8  ;;  %v1208_v16 = vsel %vm333_vm0, %v330_v10, %v332_v11  ;;  %v285_v37 = vld [vmem:[#allocation5 + $0x3] ss:$8 sm:$0x3]  ;;  %v347_v39 = vld [vmem:[#allocation5 + $0x1] ss:$8 sm:$0x3] }
  0x37   : > { %vm327_vm1 = vcmp.eq.s32.totalorder %v238_v6, 0  ;;  %v245_v20 = vand.u32 15, %v233_v17  ;;  %v1220_v21 = vsel %vm420_vm2, %v416_v18, %v418_v19  ;;  %v423_v22 = vsel %vm420_vm2, %v418_v19, %v416_v18  ;;  %v313_v56 = vld [vmem:[#allocation5 + $0x5] ss:$8 sm:$0x3]  ;;  %s628_s6 = sshll.u32 %s224_s30, 4  ;;  %s629_s6 = int_to_ptr.vmem [resolvable:$true] %s628_s6 }
  0x38   : > { %v1196_v12 = vsel %vm327_vm1, 0.0, %v336_v9  ;;  %v1200_v14 = vsel %vm327_vm1, 0.0, %v337_v13  ;;  %v424_v26 = vsel %vm420_vm2, %v419_v24, %v417_v23  ;;  %v1234_v28 = vsel %vm420_vm2, %v417_v23, %v419_v24  ;;  %579 = vmatpush.bf16.msra.mxu0 %v783_v49  ;;  %599 = vmatpush.bf16.msra.mxu1 %v783_v49  ;;  %v779_v49 = vld [vmem:[#allocation7 + $0x10] sm:$0xff]  ;;  %s630_s9 = sshll.u32 %s627_s5, 4  ;;  %s615_s16 = scalar_lea.sflag [#allocation4], %s1154_s20  ;;  %s631_s9 = int_to_ptr.hbm [resolvable:$true] %s630_s9 }
  0x39   : > { %vm415_vm3 = vcmp.eq.s32.totalorder %v245_v20, 15  ;;  %vm279_vm4 = vcmp.lt.s32.totalorder %v1248_v33, 16  ;;  %v262_v38 = vperm.slane %v259_v34, 1  ;;  %v261_v40 = vperm.slane %v259_v34, 0  ;;  %s965_s10 = sshra.s32 %s631_s9, 4  ;;  %s971_s25 = scalar_lea.hbm %s1359_s3, 64  ;;  %s966_s10 = int_to_ptr.hbm [resolvable:$true] %s965_s10 }
  0x3a   : > { %275 = vrot.lane.b32.xlu1 %v1178_v3, %s1029_s23  ;;  %271 = vrot.lane.b32.xlu0 %v1180_v4, %s1029_s23  ;;  %v1228_v25 = vsel %vm415_vm3, 0.0, %v423_v22  ;;  %v1232_v27 = vsel %vm415_vm3, 0.0, %v424_v26  ;;  %v287_v41 = vperm.slane %v285_v37, 0  ;;  %v288_v42 = vperm.slane %v285_v37, 1  ;;  %v780_v37 = vld [vmem:[#allocation7 + $0x18] sm:$0xff]  ;;  %s967_s21 = scalar_lea.hbm %s966_s10, 32  ;;  %p972_p11 = scmp.lt.s32.totalorder %s966_s10, %s1359_s3 }
  0x3b   : > { %301 = vrot.lane.b32.xlu2 %v1180_v4, %s1030_s29  ;;  %v350_v50 = vperm.slane %v347_v39, 1  ;;  %v266_v51 = vmul.f32 %v262_v38, %v1168_v0  ;;  %v349_v52 = vperm.slane %v347_v39, 0  ;;  %v265_v53 = vmul.f32 %v261_v40, %v1170_v1  ;;  %v373_v26 = vld [vmem:[#allocation5] ss:$8 sm:$0x3]  ;;  %p968_p1 = scmp.ne.s32.totalorder %s966_s10, %s967_s21  ;;  %p973_p9 = scmp.lt.s32.totalorder %s971_s25, %s967_s21 }
  0x3c   : > { %v267_v54 = vmul.f32 %v261_v40, %v1180_v4  ;;  %v268_v55 = vmul.f32 %v262_v38, %v1178_v3  ;;  %vm307_vm5 = vcmp.lt.s32.totalorder %v1248_v33, 112  ;;  %v315_v2 = vperm.slane %v313_v56, 0  ;;  %580 = vmatpush.bf16.msra.mxu0 %v782_v61  ;;  %600 = vmatpush.bf16.msra.mxu1 %v782_v61 }
  0x3d   : > { %v354_v63 = vmul.f32 %v350_v50, %v1200_v14  ;;  %v316_v5 = vperm.slane %v313_v56, 1  ;;  %v355_v6 = vmul.f32 %v349_v52, %v1202_v15  ;;  %v353_v7 = vmul.f32 %v349_v52, %v1196_v12  ;;  %p969_p4 = pnand %p968_p1, %p1124_p5  ;;  %p974_p2 = por %p973_p9, %p972_p11 }
  0x3e   : > { %v356_v8 = vmul.f32 %v350_v50, %v1208_v16  ;;  %v376_v38 = vperm.slane %v373_v26, 1 }
  0x3f   : > { %p970_p8 = pneg %p969_p4 }
  0x41   : > { %p975_p10 = pnand %p974_p2, %p970_p8 }
  0x42   : > { %305 = vrot.lane.b32.xlu1 %v1178_v3, %s1030_s29  ;;  %303 = vrot.lane.b32.xlu0 %v1168_v0, %s1030_s29 }
  0x43   : > { %361 = vrot.lane.b32.xlu2 %v1196_v12, %s1029_s23 }
  0x4a   : > { %365 = vrot.lane.b32.xlu1 %v1200_v14, %s1029_s23  ;;  %363 = vrot.lane.b32.xlu0 %v1202_v15, %s1029_s23 }
  0x4b   : > { %367 = vrot.lane.b32.xlu2 %v1208_v16, %s1029_s23 }
  0x52   : > { %389 = vrot.lane.b32.xlu1 %v1202_v15, %s1030_s29  ;;  %387 = vrot.lane.b32.xlu0 %v1196_v12, %s1030_s29 }
  0x53   : > { %391 = vrot.lane.b32.xlu2 %v1200_v14, %s1030_s29 }
  0x5a   : > { %448 = vrot.lane.b32.xlu1 %v1220_v21, %s1029_s23  ;;  %393 = vrot.lane.b32.xlu0 %v1208_v16, %s1030_s29  ;;  %v781_v16 = vld [vmem:[#allocation7 + $0x20] sm:$0xff] }
  0x5b   : > { %450 = vrot.lane.b32.xlu2 %v1228_v25, %s1029_s23  ;;  %581 = vmatpush.bf16.msra.mxu0 %v781_v16 }
  0x5c   : > { %601 = vmatpush.bf16.msra.mxu1 %v781_v16 }
  0x5f   : > { %582 = vmatpush.bf16.msra.mxu0 %v780_v37 }
  0x60   : > { %602 = vmatpush.bf16.msra.mxu1 %v780_v37 }
  0x62   : > { %454 = vrot.lane.b32.xlu1 %v1232_v27, %s1029_s23  ;;  %452 = vrot.lane.b32.xlu0 %v1234_v28, %s1029_s23 }
  0x63   : > { %475 = vrot.lane.b32.xlu2 %v1220_v21, %s1030_s29  ;;  %583 = vmatpush.bf16.msra.mxu0 %v779_v49 }
  0x64   : > { %603 = vmatpush.bf16.msra.mxu1 %v779_v49 }
  0x6a   : > { %479 = vrot.lane.b32.xlu1 %v1234_v28, %s1030_s29  ;;  %477 = vrot.lane.b32.xlu0 %v1228_v25, %s1030_s29 }
  0x6b   : > { %481 = vrot.lane.b32.xlu2 %v1232_v27, %s1030_s29 }
  0x8d   : > { %v300_v29 = vpop.permute.xlu2 %299 }
  0x95   : > { %v302_v30 = vpop.permute.xlu2 %301 }
  0x9d   : > { %v1250_v35 = vpop.permute.xlu2 %361 }
  0xa4   : > { %v274_v31 = vpop.permute.xlu1 %273  ;;  %v270_v32 = vpop.permute.xlu0 %269 }
  0xa5   : > { %v280_v45 = vsel %vm279_vm4, %v270_v32, %v274_v31  ;;  %v282_v46 = vsel %vm279_vm4, %v274_v31, %v270_v32  ;;  %v368_v62 = vpop.permute.xlu2 %367 }
  0xa6   : > { %v291_v57 = vmul.f32 %v287_v41, %v282_v46  ;;  %v292_v58 = vmul.f32 %v288_v42, %v280_v45 }
  0xa8   : > { %v295_v9 = vadd.f32 %v291_v57, %v265_v53  ;;  %v296_v10 = vadd.f32 %v292_v58, %v266_v51 }
  0xac   : > { %v276_v43 = vpop.permute.xlu1 %275  ;;  %v272_v44 = vpop.permute.xlu0 %271 }
  0xad   : > { %v281_v47 = vsel %vm279_vm4, %v272_v44, %v276_v43  ;;  %v283_v48 = vsel %vm279_vm4, %v276_v43, %v272_v44 }
  0xae   : > { %v293_v59 = vmul.f32 %v287_v41, %v283_v48  ;;  %v294_v60 = vmul.f32 %v288_v42, %v281_v47 }
  0xb0   : > { %v297_v11 = vadd.f32 %v293_v59, %v267_v54  ;;  %v298_v13 = vadd.f32 %v294_v60, %v268_v55  ;;  %v434_v54 = vld [vmem:[#allocation5 + $0x7] ss:$8 sm:$0x3]  ;;  %v400_v55 = vld [vmem:[#allocation5 + $0x2] ss:$8 sm:$0x3] }
  0xb1   : > { %v436_v60 = vperm.slane %v434_v54, 0  ;;  %v437_v61 = vperm.slane %v434_v54, 1 }
  0xb4   : > { %v306_v17 = vpop.permute.xlu1 %305  ;;  %v304_v18 = vpop.permute.xlu0 %303 }
  0xb5   : > { %v309_v19 = vsel %vm307_vm5, %v302_v30, %v306_v17  ;;  %v311_v14 = vsel %vm307_vm5, %v306_v17, %v302_v30  ;;  %v308_v15 = vsel %vm307_vm5, %v300_v29, %v304_v18  ;;  %v310_v12 = vsel %vm307_vm5, %v304_v18, %v300_v29  ;;  %v392_v29 = vpop.permute.xlu2 %391 }
  0xb6   : > { %v321_v20 = vmul.f32 %v315_v2, %v309_v19  ;;  %v322_v22 = vmul.f32 %v316_v5, %v311_v14  ;;  %v319_v23 = vmul.f32 %v315_v2, %v308_v15  ;;  %v320_v24 = vmul.f32 %v316_v5, %v310_v12 }
  0xb7   : > { %v375_v30 = vperm.slane %v373_v26, 0  ;;  %v403_v2 = vperm.slane %v400_v55, 1  ;;  %v461_v26 = vld [vmem:[#allocation5 + $0x6] ss:$8 sm:$0x3] }
  0xb8   : > { %v325_v31 = vadd.f32 %v321_v20, %v297_v11  ;;  %v326_v32 = vadd.f32 %v322_v22, %v298_v13  ;;  %v323_v34 = vadd.f32 %v319_v23, %v295_v9  ;;  %v324_v36 = vadd.f32 %v320_v24, %v296_v10 }
  0xb9   : > { %v440_v9 = vmul.f32 %v436_v60, %v1220_v21  ;;  %v441_v10 = vmul.f32 %v437_v61, %v1234_v28  ;;  %v443_v21 = vmul.f32 %v437_v61, %v1232_v27  ;;  %v442_v28 = vmul.f32 %v436_v60, %v1228_v25 }
  0xba   : > { %v357_v39 = vadd.f32 %v353_v7, %v323_v34  ;;  %v358_v40 = vadd.f32 %v354_v63, %v324_v36  ;;  %v360_v41 = vadd.f32 %v356_v8, %v326_v32  ;;  %v359_v42 = vadd.f32 %v355_v6, %v325_v31 }
  0xbb   : > { %v402_v63 = vperm.slane %v400_v55, 0  ;;  %v463_v36 = vperm.slane %v461_v26, 0  ;;  %v464_v37 = vperm.slane %v461_v26, 1 }
  0xbc   : > { %v366_v43 = vpop.permute.xlu1 %365  ;;  %v364_v44 = vpop.permute.xlu0 %363 }
  0xbd   : > { %v369_v45 = vsel %vm279_vm4, %v1250_v35, %v366_v43  ;;  %v371_v46 = vsel %vm279_vm4, %v366_v43, %v1250_v35  ;;  %v370_v47 = vsel %vm279_vm4, %v364_v44, %v368_v62  ;;  %v372_v48 = vsel %vm279_vm4, %v368_v62, %v364_v44  ;;  %v778_v35 = vld [vmem:[#allocation7 + $0x8] sm:$0xff]  ;;  %v777_v62 = vld [vmem:[#allocation7] sm:$0xff]  ;;  %v451_v17 = vpop.permute.xlu2 %450 }
  0xbe   : > { %v379_v50 = vmul.f32 %v375_v30, %v371_v46  ;;  %v380_v51 = vmul.f32 %v376_v38, %v369_v45  ;;  %v381_v52 = vmul.f32 %v375_v30, %v372_v48  ;;  %v382_v53 = vmul.f32 %v376_v38, %v370_v47  ;;  %584 = vmatpush.bf16.msra.mxu0 %v778_v35  ;;  %v488_v46 = vld [vmem:[#allocation5 + $0x10] ss:$8 sm:$0x3] }
  0xbf   : > { %604 = vmatpush.bf16.msra.mxu1 %v778_v35 }
  0xc0   : > { %v383_v56 = vadd.f32 %v379_v50, %v357_v39  ;;  %v384_v57 = vadd.f32 %v380_v51, %v358_v40  ;;  %v385_v58 = vadd.f32 %v381_v52, %v359_v42  ;;  %v386_v59 = vadd.f32 %v382_v53, %v360_v41 }
  0xc1   : > { %v490_v52 = vperm.slane %v488_v46, 0  ;;  %v491_v53 = vperm.slane %v488_v46, 1 }
  0xc2   : > { %585 = vmatpush.bf16.msra.mxu0 %v777_v62 }
  0xc3   : > { %605 = vmatpush.bf16.msra.mxu1 %v777_v62 }
  0xc4   : > { %v390_v5 = vpop.permute.xlu1 %389  ;;  %v388_v6 = vpop.permute.xlu0 %387 }
  0xc5   : > { %v395_v7 = vsel %vm307_vm5, %v388_v6, %v392_v29  ;;  %v397_v8 = vsel %vm307_vm5, %v392_v29, %v388_v6  ;;  %v476_v34 = vpop.permute.xlu2 %475 }
  0xc6   : > { %v406_v11 = vmul.f32 %v402_v63, %v395_v7  ;;  %v407_v13 = vmul.f32 %v403_v2, %v397_v8 }
  0xc8   : > { %v410_v18 = vadd.f32 %v406_v11, %v383_v56  ;;  %v411_v19 = vadd.f32 %v407_v13, %v384_v57 }
  0xca   : > { %v445_v14 = vadd.f32 %v441_v10, %v411_v19  ;;  %v444_v15 = vadd.f32 %v440_v9, %v410_v18 }
  0xcc   : > { %v449_v12 = vpop.permute.xlu1 %448  ;;  %v394_v16 = vpop.permute.xlu0 %393 }
  0xcd   : > { %v396_v20 = vsel %vm307_vm5, %v390_v5, %v394_v16  ;;  %v398_v22 = vsel %vm307_vm5, %v394_v16, %v390_v5  ;;  %v482_v51 = vpop.permute.xlu2 %481 }
  0xce   : > { %v408_v23 = vmul.f32 %v402_v63, %v396_v20  ;;  %v409_v24 = vmul.f32 %v403_v2, %v398_v22 }
  0xd0   : > { %v412_v31 = vadd.f32 %v408_v23, %v385_v58  ;;  %v413_v32 = vadd.f32 %v409_v24, %v386_v59 }
  0xd2   : > { %v446_v30 = vadd.f32 %v442_v28, %v412_v31  ;;  %v447_v38 = vadd.f32 %v443_v21, %v413_v32 }
  0xd4   : > { %v455_v39 = vpop.permute.xlu1 %454  ;;  %v453_v40 = vpop.permute.xlu0 %452 }
  0xd5   : > { %v457_v41 = vsel %vm279_vm4, %v451_v17, %v455_v39  ;;  %v459_v27 = vsel %vm279_vm4, %v455_v39, %v451_v17  ;;  %v456_v25 = vsel %vm279_vm4, %v449_v12, %v453_v40  ;;  %v458_v42 = vsel %vm279_vm4, %v453_v40, %v449_v12 }
  0xd6   : > { %v469_v29 = vmul.f32 %v463_v36, %v459_v27  ;;  %v470_v43 = vmul.f32 %v464_v37, %v457_v41  ;;  %v467_v44 = vmul.f32 %v463_v36, %v458_v42  ;;  %v468_v45 = vmul.f32 %v464_v37, %v456_v25 }
  0xd8   : > { %v473_v47 = vadd.f32 %v469_v29, %v446_v30  ;;  %v474_v48 = vadd.f32 %v470_v43, %v447_v38  ;;  %v471_v49 = vadd.f32 %v467_v44, %v444_v15  ;;  %v472_v50 = vadd.f32 %v468_v45, %v445_v14 }
  0xdc   : > { %v480_v54 = vpop.permute.xlu1 %479  ;;  %v478_v55 = vpop.permute.xlu0 %477 }
  0xdd   : > { %v483_v56 = vsel %vm307_vm5, %v476_v34, %v480_v54  ;;  %v485_v57 = vsel %vm307_vm5, %v480_v54, %v476_v34  ;;  %v484_v58 = vsel %vm307_vm5, %v478_v55, %v482_v51  ;;  %v486_v59 = vsel %vm307_vm5, %v482_v51, %v478_v55 }
  0xde   : > { %v494_v35 = vmul.f32 %v490_v52, %v483_v56  ;;  %v495_v60 = vmul.f32 %v491_v53, %v485_v57  ;;  %v496_v61 = vmul.f32 %v490_v52, %v484_v58  ;;  %v497_v63 = vmul.f32 %v491_v53, %v486_v59 }
  0xe0   : > { %v498_v2 = vadd.f32 %v494_v35, %v471_v49  ;;  %v499_v62 = vadd.f32 %v495_v60, %v472_v50  ;;  %v500_v5 = vadd.f32 %v496_v61, %v473_v47  ;;  %v501_v6 = vadd.f32 %v497_v63, %v474_v48 }
  0xe2   : > { %v502_v7 = vmax.f32 %v498_v2, 0.0  ;;  %v503_v8 = vmax.f32 %v499_v62, 0.0  ;;  %v504_v9 = vmax.f32 %v500_v5, 0.0  ;;  %v505_v10 = vmax.f32 %v501_v6, 0.0 }
  0xe4   : > { %v506_v11 = vpack.c.bf16 %v503_v8, %v502_v7  ;;  %v507_v13 = vpack.c.bf16 %v505_v10, %v504_v9 }
  0xe6   : > { %v526_v17 = vunpack.c.l.b16 %v506_v11  ;;  %v527_v18 = vunpack.c.l.b16 %v507_v13  ;;  %v594_v33 = vunpack.c.h.b16 %v506_v11  ;;  %v595_v19 = vunpack.c.h.b16 %v507_v13 }
  0xe8   : > { %v528_v14 = vpack.c.b16 %v527_v18, %v526_v17  ;;  %v596_v15 = vpack.c.b16 %v595_v19, %v594_v33 }
  0xea   : > { %586 = vmatmul.bf16.vlgmr.msra.gmra.mxu0 %v528_v14  ;;  %606 = vmatmul.bf16.vlgmr.msra.gmra.mxu1 %v596_v15 }
 0x167   : > { %v587_v12 = vpop.f32.mrf.mxu0  ;;  %v607_v16 = vpop.f32.mrf.mxu1 }
 0x168   : > { %v588_v20 = vadd.f32 %v587_v12, %v1170_v1  ;;  %v608_v22 = vadd.f32 %v607_v16, %v1168_v0 }
 0x16a   : > { %592 = vst [vmem:[%s224_s30] sm:$0xff] %v588_v20 }
 0x16b   : > { %612 = vst [vmem:[%s224_s30 + $0x8] sm:$0xff] %v608_v22 }
 0x16f   : > { %v589_v21 = vpop.f32.mrf.mxu0  ;;  %v609_v28 = vpop.f32.mrf.mxu1 }
 0x170   : > { %v590_v1 = vadd.f32 %v589_v21, %v1180_v4  ;;  %v610_v0 = vadd.f32 %v609_v28, %v1178_v3 }
 0x172   : > { %593 = vst [vmem:[%s224_s30 + $0x10] sm:$0xff] %v590_v1 }
 0x173   : > { %613 = vst [vmem:[%s224_s30 + $0x18] sm:$0xff] %v610_v0 }
 0x174   : > { %978 = shalt.err (!%p975_p10)
}
 0x175   : > { %s1031_s20 = smov 256  }
 0x176   : > { %797 = dma.vmem_to_hbm [thread:$0]  (%p1124_p5), %s629_s6, 512, %s631_s9, %s615_s16, %s1031_s20, %s1031_s20, %s1029_s23  }
 0x177 PF: > { %s645_s7 = sand.u32 1, %s1009_s12   ;;  %p1365_p12 = scmp.ge.s32.totalorder %s1021_s15, 2 }
 0x178   : > { %s646_s29 = scalar_lea.sflag [#allocation4], %s645_s7 }
 0x179   : > { %p811_p13 = pnand %p1365_p12, %p1087_p6 }
 0x17b   : > { %p812_p0 = pneg %p811_p13 }
 0x17d   : > { %1004 = dma.done.wait (%p812_p0), %s646_s29, 512  }
 0x17e   : > { %1006 = vsyncadd (%p812_p0), %s646_s29, 4294966784  ;;  %p17_p3 = scmp.ge.s32.totalorder %s1111_s8, 4   ;;  %s1366_s12 = smov %s1013_s13 }
 0x17f   : > { %s1367_s13 = smov %s1017_s14  ;;  %s1368_s14 = smov %s1120_s11 }
 0x180   : > { %s1369_s15 = smov %s1111_s8  ;;  %19 = sbr.rel (!%p17_p3) target bundleno = 6 (0x6), region = 93 }
 0x185   :  { %652 = vsyncpa [#allocation3], 1 }
 0x186   :  { %654 = vsyncpa [#allocation3 + $0x1], 1 }
 0x187   :  { %655 = vsyncpa [#allocation6], 1 }
 0x188   :  { %656 = vsyncpa [#allocation4], 1 }
 0x189   :  { %658 = vsyncpa [#allocation4 + $0x1], 1 }

</bundles_post_ra>
